<compile_context>
chip_gen: v7x
topology: tpu7x:2x2x1
jax: 0.10.0
libtpu: 0.0.40
codegen_flags: <defaults>
</compile_context>

<pallas_src>
import jax
import jax.numpy as jnp
from jax.experimental import pallas as pl
from jax.experimental.pallas import tpu as pltpu


def net_kernel(xT_ref, w1_ref, b1_ref, w2_ref, b2_ref, o_ref):
    # xT_ref: [2, TILE_B]   w1_ref: [128, 2]  b1_ref: [128, 1]
    # w2_ref: [10, 128]     b2_ref: [10, 1]   o_ref:  [10, TILE_B]
    xT = xT_ref[...]
    w1 = w1_ref[...]

    # ---- fc1 + ReLU on the VPU (a K=2 contraction doesn't deserve the MXU) ----
    # hT[j, b] = relu(w1[j,0]*x[b,0] + w1[j,1]*x[b,1] + b1[j])
    hT = (w1[:, 0:1] * xT[0:1, :]        # [128,1] x [1,TILE_B] outer-product FMA
          + w1[:, 1:2] * xT[1:2, :]
          + b1_ref[...])                 # [128,1] bias, broadcast over lanes
    hT = jnp.maximum(hT, 0.0)            # [128, TILE_B]

    # ---- fc2 on the MXU: classes on sublanes, batch on lanes ----
    logits = jnp.dot(w2_ref[...], hT, preferred_element_type=jnp.float32)  # [10, TILE_B]
    logits = logits + b2_ref[...]

    # ---- numerically stable log_softmax over the class (sublane) axis ----
    m = jnp.max(logits, axis=0, keepdims=True)           # [1, TILE_B]
    s = logits - m
    lse = jnp.log(jnp.sum(jnp.exp(s), axis=0, keepdims=True))
    o_ref[...] = s - lse                                  # [10, TILE_B]


def _round_up(a, m):
    return ((a + m - 1) // m) * m


def _choose_tiling(B):
    """(n_tiles, TILE_B, B_pad): TILE_B multiple of 128 (batch is on lanes), tiles large
    (<=4096) to amortize per-grid-step overhead, >=2 tiles once there's enough work
    (v7x has 2 TensorCores), padding bounded by <128 dead rows per tile."""
    LANE = 128
    MAX_TILE = 4096
    b_pad = _round_up(max(B, 1), LANE)
    if b_pad <= 2 * LANE:
        n_tiles = 1
    else:
        n_tiles = max(2, -(-b_pad // MAX_TILE))
    tile = _round_up(-(-b_pad // n_tiles), LANE)
    return n_tiles, tile, n_tiles * tile


def net_forward(x, w1, b1, w2, b2):
    """x: [B, 2] f32.  Weights in PyTorch nn.Linear layout:
    w1: [128, 2], b1: [128], w2: [10, 128], b2: [10].  Returns [B, 10] log-probs."""
    B, in_dim = x.shape
    hid = w1.shape[0]
    out_dim = w2.shape[0]

    n_tiles, tile_b, b_pad = _choose_tiling(B)

    # Put batch on the lane axis: [B,2] -> [2,B_pad]. Tiny (8 B/row) XLA op; padded
    # columns are zeros -> finite log_softmax, sliced off below.
    xT = x.T
    if b_pad != B:
        xT = jnp.pad(xT, ((0, 0), (0, b_pad - B)))

    b1c = b1.reshape(hid, 1)
    b2c = b2.reshape(out_dim, 1)

    outT = pl.pallas_call(
        net_kernel,
        out_shape=jax.ShapeDtypeStruct((out_dim, b_pad), jnp.float32),
        grid=(n_tiles,),
        in_specs=[
            pl.BlockSpec((in_dim, tile_b), lambda i: (0, i)),   # xT: streamed per batch tile
            pl.BlockSpec((hid, in_dim),    lambda i: (0, 0)),   # w1: VMEM-resident
            pl.BlockSpec((hid, 1),         lambda i: (0, 0)),   # b1: VMEM-resident
            pl.BlockSpec((out_dim, hid),   lambda i: (0, 0)),   # w2: VMEM-resident
            pl.BlockSpec((out_dim, 1),     lambda i: (0, 0)),   # b2: VMEM-resident
        ],
        out_specs=pl.BlockSpec((out_dim, tile_b), lambda i: (0, i)),
        compiler_params=pltpu.CompilerParams(
            dimension_semantics=("parallel",),   # megacore sharding on v7x
        ),
    )(xT, w1, b1c, w2, b2c)

    # [10, B_pad] -> [B, 10]; strips batch padding. Tiny (40 B/row) XLA transpose.
    return outT[:, :B].T


def init_params(key):
    # PyTorch nn.Linear default init: U(-1/sqrt(fan_in), 1/sqrt(fan_in)), PyTorch layout.
    k1, k2, k3, k4 = jax.random.split(key, 4)
    in1, hid, out = 2, 128, 10
    bnd1 = 1.0 / jnp.sqrt(in1)
    bnd2 = 1.0 / jnp.sqrt(hid)
    w1 = jax.random.uniform(k1, (hid, in1), jnp.float32, -bnd1, bnd1)
    b1 = jax.random.uniform(k2, (hid,), jnp.float32, -bnd1, bnd1)
    w2 = jax.random.uniform(k3, (out, hid), jnp.float32, -bnd2, bnd2)
    b2 = jax.random.uniform(k4, (out,), jnp.float32, -bnd2, bnd2)
    return w1, b1, w2, b2


def _reference(x, w1, b1, w2, b2):
    h = jnp.maximum(x @ w1.T + b1, 0.0)
    logits = h @ w2.T + b2
    return jax.nn.log_softmax(logits, axis=1)


if __name__ == "__main__":
    key = jax.random.PRNGKey(0)
    kx, kx2, kp = jax.random.split(key, 3)
    w1, b1, w2, b2 = init_params(kp)

    # Small batch (single tile, padded-batch path).
    x = jax.random.normal(kx, (8, 2), jnp.float32)
    out = net_forward(x, w1, b1, w2, b2)
    jax.block_until_ready(out)
    ref = _reference(x, w1, b1, w2, b2)
    assert out.shape == ref.shape, "shape mismatch vs JAX reference"
    assert jnp.allclose(out, ref, atol=1e-5, rtol=1e-5), "mismatch vs JAX reference"

    # Multi-tile path (grid > 1) with a non-multiple-of-128 batch.
    x2 = jax.random.normal(kx2, (300, 2), jnp.float32)
    out2 = net_forward(x2, w1, b1, w2, b2)
    jax.block_until_ready(out2)
    ref2 = _reference(x2, w1, b1, w2, b2)
    assert out2.shape == ref2.shape, "shape mismatch vs JAX reference (multi-tile)"
    assert jnp.allclose(out2, ref2, atol=1e-5, rtol=1e-5), "mismatch vs JAX reference (multi-tile)"

    print("KERNEL_OK")
</pallas_src>

<mosaic_0001>
module attributes {stable_mosaic.version = 11 : i64} {
  func.func @net_kernel(%arg0: i32, %arg1: memref<2x128xf32, #tpu.memory_space<vmem>>, %arg2: memref<128x2xf32, #tpu.memory_space<vmem>>, %arg3: memref<128x1xf32, #tpu.memory_space<vmem>>, %arg4: memref<10x128xf32, #tpu.memory_space<vmem>>, %arg5: memref<10x1xf32, #tpu.memory_space<vmem>>, %arg6: memref<10x128xf32, #tpu.memory_space<vmem>>) attributes {dimension_semantics = [#tpu.dimension_semantics<parallel>], iteration_bounds = array<i64: 1>, scalar_prefetch = 0 : i64, scratch_operands = 0 : i64, tpu.core_type = #tpu.core_type<tc>, window_params = [{transform_indices = @transform_0, window_bounds = array<i64: 2, 128>}, {pipeline_mode = #tpu.pipeline_mode<synchronous>, transform_indices = @transform_1, window_bounds = array<i64: 128, 2>}, {pipeline_mode = #tpu.pipeline_mode<synchronous>, transform_indices = @transform_2, window_bounds = array<i64: 128, 1>}, {pipeline_mode = #tpu.pipeline_mode<synchronous>, transform_indices = @transform_3, window_bounds = array<i64: 10, 128>}, {pipeline_mode = #tpu.pipeline_mode<synchronous>, transform_indices = @transform_4, window_bounds = array<i64: 10, 1>}, {transform_indices = @transform_5, window_bounds = array<i64: 10, 128>}]} {
    %c0 = arith.constant 0 : index
    %c0_0 = arith.constant 0 : index
    %0 = vector.load %arg1[%c0, %c0_0] : memref<2x128xf32, #tpu.memory_space<vmem>>, vector<2x128xf32>
    %c0_1 = arith.constant 0 : index
    %c0_2 = arith.constant 0 : index
    %1 = vector.load %arg2[%c0_1, %c0_2] : memref<128x2xf32, #tpu.memory_space<vmem>>, vector<128x2xf32>
    %2 = vector.extract_strided_slice %1 {offsets = [0, 0], sizes = [128, 1], strides = [1, 1]} : vector<128x2xf32> to vector<128x1xf32>
    %3 = vector.extract_strided_slice %0 {offsets = [0, 0], sizes = [1, 128], strides = [1, 1]} : vector<2x128xf32> to vector<1x128xf32>
    %4 = vector.broadcast %2 : vector<128x1xf32> to vector<128x128xf32>
    %5 = vector.broadcast %3 : vector<1x128xf32> to vector<128x128xf32>
    %6 = arith.mulf %4, %5 : vector<128x128xf32>
    %7 = vector.extract_strided_slice %1 {offsets = [0, 1], sizes = [128, 1], strides = [1, 1]} : vector<128x2xf32> to vector<128x1xf32>
    %8 = vector.extract_strided_slice %0 {offsets = [1, 0], sizes = [1, 128], strides = [1, 1]} : vector<2x128xf32> to vector<1x128xf32>
    %9 = vector.broadcast %7 : vector<128x1xf32> to vector<128x128xf32>
    %10 = vector.broadcast %8 : vector<1x128xf32> to vector<128x128xf32>
    %11 = arith.mulf %9, %10 : vector<128x128xf32>
    %12 = arith.addf %6, %11 : vector<128x128xf32>
    %c0_3 = arith.constant 0 : index
    %c0_4 = arith.constant 0 : index
    %13 = vector.load %arg3[%c0_3, %c0_4] : memref<128x1xf32, #tpu.memory_space<vmem>>, vector<128x1xf32>
    %14 = vector.broadcast %13 : vector<128x1xf32> to vector<128x128xf32>
    %15 = arith.addf %12, %14 : vector<128x128xf32>
    %cst = arith.constant 0.000000e+00 : f32
    %16 = vector.broadcast %cst : f32 to vector<128x128xf32>
    %17 = arith.maximumf %15, %16 : vector<128x128xf32>
    %c0_5 = arith.constant 0 : index
    %c0_6 = arith.constant 0 : index
    %18 = vector.load %arg4[%c0_5, %c0_6] : memref<10x128xf32, #tpu.memory_space<vmem>>, vector<10x128xf32>
    %cst_7 = arith.constant dense<0.000000e+00> : vector<10x128xf32>
    %19 = tpu.matmul %18, %17, %cst_7 {dimension_numbers = #tpu.dot_dimension_numbers<[1], [0], [0], [1], [0, 0, 1, 1], [], []>} : vector<10x128xf32>, vector<128x128xf32>, vector<10x128xf32> -> vector<10x128xf32>
    %c0_8 = arith.constant 0 : index
    %c0_9 = arith.constant 0 : index
    %20 = vector.load %arg5[%c0_8, %c0_9] : memref<10x1xf32, #tpu.memory_space<vmem>>, vector<10x1xf32>
    %21 = vector.broadcast %20 : vector<10x1xf32> to vector<10x128xf32>
    %22 = arith.addf %19, %21 : vector<10x128xf32>
    %cst_10 = arith.constant dense<0xFF800000> : vector<128xf32>
    %23 = vector.multi_reduction <maximumf>, %22, %cst_10 [0] : vector<10x128xf32> to vector<128xf32>
    %24 = vector.shape_cast %23 : vector<128xf32> to vector<1x128xf32>
    %25 = vector.broadcast %24 : vector<1x128xf32> to vector<10x128xf32>
    %26 = arith.subf %22, %25 : vector<10x128xf32>
    %27 = math.exp %26 : vector<10x128xf32>
    %cst_11 = arith.constant dense<0.000000e+00> : vector<128xf32>
    %28 = vector.multi_reduction <add>, %27, %cst_11 [0] : vector<10x128xf32> to vector<128xf32>
    %29 = vector.shape_cast %28 : vector<128xf32> to vector<1x128xf32>
    %30 = math.log %29 : vector<1x128xf32>
    %31 = vector.broadcast %30 : vector<1x128xf32> to vector<10x128xf32>
    %32 = arith.subf %26, %31 : vector<10x128xf32>
    %c0_12 = arith.constant 0 : index
    %c0_13 = arith.constant 0 : index
    %33 = vector.load %arg6[%c0_12, %c0_13] : memref<10x128xf32, #tpu.memory_space<vmem>>, vector<10x128xf32>
    tpu.vector_store %arg6[%c0_12, %c0_13], %32 {strides = array<i32>} : memref<10x128xf32, #tpu.memory_space<vmem>>, vector<10x128xf32>,
    return
  }
  func.func @transform_0(%arg0: i32) -> (i32, i32) {
    %c0_i32 = arith.constant 0 : i32
    %c0_i32_0 = arith.constant 0 : i32
    return %c0_i32, %arg0 : i32, i32
  }
  func.func @transform_1(%arg0: i32) -> (i32, i32) {
    %c0_i32 = arith.constant 0 : i32
    %c0_i32_0 = arith.constant 0 : i32
    %c0_i32_1 = arith.constant 0 : i32
    return %c0_i32, %c0_i32_0 : i32, i32
  }
  func.func @transform_2(%arg0: i32) -> (i32, i32) {
    %c0_i32 = arith.constant 0 : i32
    %c0_i32_0 = arith.constant 0 : i32
    %c0_i32_1 = arith.constant 0 : i32
    return %c0_i32, %c0_i32_0 : i32, i32
  }
  func.func @transform_3(%arg0: i32) -> (i32, i32) {
    %c0_i32 = arith.constant 0 : i32
    %c0_i32_0 = arith.constant 0 : i32
    %c0_i32_1 = arith.constant 0 : i32
    return %c0_i32, %c0_i32_0 : i32, i32
  }
  func.func @transform_4(%arg0: i32) -> (i32, i32) {
    %c0_i32 = arith.constant 0 : i32
    %c0_i32_0 = arith.constant 0 : i32
    %c0_i32_1 = arith.constant 0 : i32
    return %c0_i32, %c0_i32_0 : i32, i32
  }
  func.func @transform_5(%arg0: i32) -> (i32, i32) {
    %c0_i32 = arith.constant 0 : i32
    %c0_i32_0 = arith.constant 0 : i32
    return %c0_i32, %arg0 : i32, i32
  }
}

</mosaic_0001>

<bundles_post_ra>
// kernel: tpu_custom_call.1
= control target key start
LH: loop header
LB: loop body
LE: loop exit
PB: predicated region body
PF: predicated region fallthrough
CT: control target
= control target key end

     0   :  { %v638_v2 = vmov 1   ;;  %v639_v7 = vmov 0   ;;  %s867_s0 = inlined_call_operand.vmem [shape: f32[2,128], index: 0, kind: input, shape index: {}]   ;;  %s868_s1 = inlined_call_operand.vmem [shape: f32[128,2], index: 1, kind: input, shape index: {}]   ;;  %s869_s2 = inlined_call_operand.vmem [shape: f32[128,1], index: 2, kind: input, shape index: {}]   ;;  %s870_s3 = inlined_call_operand.vmem [shape: f32[10,128], index: 3, kind: input, shape index: {}]   ;;  %s871_s4 = inlined_call_operand.vmem [shape: f32[10,1], index: 4, kind: input, shape index: {}]   ;;  %s872_s5 = inlined_call_operand.hbm [shape: f32[10,128], index: 5, kind: output, shape index: {}]  }
   0x1   :  { %v24_v0 = vld [vmem:[%s868_s1 + $0x10] sm:$0xff]  ;;  %v22_v1 = vld [vmem:[%s868_s1] sm:$0xff]  ;;  %592 = vset.pattern.permute.xlu0 %v638_v2  ;;  %590 = vset.pattern.permute.xlu1 %v638_v2  ;;  %v23_v4 = vld [vmem:[%s868_s1 + $0x8] sm:$0xff] }
   0x2   :  { %147 = vperm.xlu0 %592, %v24_v0   ;;  %139 = vperm.xlu1 %590, %v22_v1   ;;  %v26_v3 = vld [vmem:[%s868_s1 + $0x20] sm:$0xff]  ;;  %v28_v5 = vld [vmem:[%s868_s1 + $0x30] sm:$0xff]  ;;  %v25_v6 = vld [vmem:[%s868_s1 + $0x18] sm:$0xff] }
   0x3   :  { %v30_v8 = vld [vmem:[%s868_s1 + $0x40] sm:$0xff] }
   0x6   :  { %155 = vperm.xlu0 %592, %v26_v3   ;;  %143 = vperm.xlu1 %590, %v23_v4  }
   0xa   :  { %163 = vperm.xlu0 %592, %v28_v5   ;;  %591 = vset.pattern.permute.xlu1 %v639_v7 }
   0xb   :  { %55 = vperm.xlu1 %591, %v25_v6  }
   0xc   :  { %10 = vsyncpa [#allocation3], 0  ;;  %v32_v9 = vld [vmem:[%s868_s1 + $0x50] sm:$0xff]  ;;  %v238_v10 = vld [vmem:[%s869_s2] sm:$0xff]  ;;  %v118_v46 = vlaneseq  ;;  %vm455_vm0 = vcmask 1041408  }
   0xd   :  { %v34_v11 = vld [vmem:[%s868_s1 + $0x60] sm:$0xff]  ;;  %v36_v12 = vld [vmem:[%s868_s1 + $0x70] sm:$0xff]  ;;  %v27_v13 = vld [vmem:[%s868_s1 + $0x28] sm:$0xff] }
   0xe   :  { %171 = vperm.xlu0 %592, %v30_v8   ;;  %v240_v14 = vld [vmem:[%s869_s2 + $0x10] sm:$0xff]  ;;  %v239_v15 = vld [vmem:[%s869_s2 + $0x8] sm:$0xff]  ;;  %v241_v16 = vld [vmem:[%s869_s2 + $0x18] sm:$0xff]  ;;  %v119_v49 = vshrl.u32 %v118_v46, 7 }
   0xf   :  { %593 = vset.pattern.permute.xlu1 %v638_v2  ;;  %v29_v17 = vld [vmem:[%s868_s1 + $0x38] sm:$0xff]  ;;  %v243_v18 = vld [vmem:[%s869_s2 + $0x28] sm:$0xff]  ;;  %v242_v20 = vld [vmem:[%s869_s2 + $0x20] sm:$0xff] }
  0x10   :  { %151 = vperm.xlu1 %593, %v25_v6   ;;  %v245_v19 = vld [vmem:[%s869_s2 + $0x38] sm:$0xff]  ;;  %v247_v21 = vld [vmem:[%s869_s2 + $0x48] sm:$0xff]  ;;  %v244_v26 = vld [vmem:[%s869_s2 + $0x30] sm:$0xff]  ;;  %v204_v52 = vsub.s32 1, %v119_v49  ;;  %v120_v53 = vsub.s32 0, %v119_v49 }
  0x11   :  { %v249_v22 = vld [vmem:[%s869_s2 + $0x58] sm:$0xff]  ;;  %v31_v23 = vld [vmem:[%s868_s1 + $0x48] sm:$0xff]  ;;  %v246_v28 = vld [vmem:[%s869_s2 + $0x40] sm:$0xff] }
  0x12   :  { %179 = vperm.xlu0 %592, %v32_v9   ;;  %v251_v24 = vld [vmem:[%s869_s2 + $0x68] sm:$0xff]  ;;  %v33_v27 = vld [vmem:[%s868_s1 + $0x58] sm:$0xff]  ;;  %v248_v30 = vld [vmem:[%s869_s2 + $0x50] sm:$0xff] }
  0x13   :  { %v369_v25 = vld [vmem:[%s871_s4 + $0x8] sm:$0x3]  ;;  %v37_v31 = vld [vmem:[%s868_s1 + $0x78] sm:$0xff]  ;;  %v250_v32 = vld [vmem:[%s869_s2 + $0x60] sm:$0xff] }
  0x14   :  { %594 = vset.pattern.permute.xlu1 %v639_v7  ;;  %v35_v29 = vld [vmem:[%s868_s1 + $0x68] sm:$0xff]  ;;  %v252_v35 = vld [vmem:[%s869_s2 + $0x70] sm:$0xff]  ;;  %v253_v38 = vld [vmem:[%s869_s2 + $0x78] sm:$0xff] }
  0x15   :  { %256 = vperm.xlu1 %594, %v238_v10   ;;  %v368_v41 = vld [vmem:[%s871_s4] sm:$0xff] }
  0x16   :  { %187 = vperm.xlu0 %592, %v34_v11   ;;  %v366_v44 = vld [vmem:[%s870_s3] sm:$0xff] }
  0x17   :  { %550 = vmatprep.mubr.f32.mxu0 %v366_v44  ;;  %v21_v54 = vld [vmem:[%s867_s0] sm:$0x3] }
  0x18   :  { %v809_v57 = vrot.slane %v21_v54, %v204_v52  ;;  %v811_v58 = vrot.slane %v21_v54, %v120_v53 }
  0x19   :  { %60 = vperm.xlu1 %594, %v26_v3  }
  0x1a   :  { %195 = vperm.xlu0 %592, %v36_v12  }
  0x1d   :  { %65 = vperm.xlu1 %594, %v27_v13  }
  0x1e   :  { %605 = vset.pattern.permute.xlu0 %v639_v7 }
  0x1f   :  { %40 = vperm.xlu0 %605, %v22_v1  }
  0x21   :  { %595 = vset.pattern.permute.xlu1 %v638_v2 }
  0x22   :  { %159 = vperm.xlu1 %595, %v27_v13  }
  0x23   :  { %45 = vperm.xlu0 %605, %v23_v4  }
  0x26   :  { %596 = vset.pattern.permute.xlu1 %v639_v7 }
  0x27   :  { %50 = vperm.xlu0 %605, %v24_v0   ;;  %266 = vperm.xlu1 %596, %v240_v14  }
  0x2b   :  { %261 = vperm.xlu0 %605, %v239_v15   ;;  %70 = vperm.xlu1 %596, %v28_v5  }
  0x2f   :  { %271 = vperm.xlu0 %605, %v241_v16   ;;  %75 = vperm.xlu1 %596, %v29_v17  }
  0x33   :  { %281 = vperm.xlu0 %605, %v243_v18   ;;  %597 = vset.pattern.permute.xlu1 %v638_v2 }
  0x34   :  { %167 = vperm.xlu1 %597, %v29_v17  }
  0x37   :  { %291 = vperm.xlu0 %605, %v245_v19  }
  0x38   :  { %598 = vset.pattern.permute.xlu1 %v639_v7 }
  0x39   :  { %276 = vperm.xlu1 %598, %v242_v20  }
  0x3b   :  { %301 = vperm.xlu0 %605, %v247_v21  }
  0x3d   :  { %80 = vperm.xlu1 %598, %v30_v8  }
  0x3f   :  { %311 = vperm.xlu0 %605, %v249_v22  }
  0x41   :  { %85 = vperm.xlu1 %598, %v31_v23  }
  0x43   :  { %321 = vperm.xlu0 %605, %v251_v24  }
  0x45   :  { %599 = vset.pattern.permute.xlu1 %v638_v2 }
  0x46   :  { %175 = vperm.xlu1 %599, %v31_v23  }
  0x47   :  { %377 = vperm.xlu0 %605, %v369_v25  }
  0x4a   :  { %600 = vset.pattern.permute.xlu1 %v639_v7 }
  0x4b   :  { %286 = vperm.xlu1 %600, %v244_v26  }
  0x4f   :  { %90 = vperm.xlu1 %600, %v32_v9  }
  0x53   :  { %95 = vperm.xlu1 %600, %v33_v27  }
  0x57   :  { %601 = vset.pattern.permute.xlu1 %v638_v2 }
  0x58   :  { %183 = vperm.xlu1 %601, %v33_v27  }
  0x5c   :  { %602 = vset.pattern.permute.xlu1 %v639_v7 }
  0x5d   :  { %296 = vperm.xlu1 %602, %v246_v28  }
  0x61   :  { %100 = vperm.xlu1 %602, %v34_v11  }
  0x65   :  { %105 = vperm.xlu1 %602, %v35_v29  }
  0x69   :  { %603 = vset.pattern.permute.xlu1 %v638_v2 }
  0x6a   :  { %191 = vperm.xlu1 %603, %v35_v29  }
  0x6e   :  { %604 = vset.pattern.permute.xlu1 %v639_v7 }
  0x6f   :  { %306 = vperm.xlu1 %604, %v248_v30  }
  0x73   :  { %110 = vperm.xlu1 %604, %v36_v12  }
  0x77   :  { %115 = vperm.xlu1 %604, %v37_v31  }
  0x7b   :  { %606 = vset.pattern.permute.xlu1 %v638_v2 }
  0x7c   :  { %199 = vperm.xlu1 %606, %v37_v31  }
  0x80   :  { %607 = vset.pattern.permute.xlu1 %v639_v7 }
  0x81   :  { %316 = vperm.xlu1 %607, %v250_v32   ;;  %v140_v33 = vpop.permute.xlu1 %139  ;;  %v148_v34 = vpop.permute.xlu0 %147 }
  0x82   :  { %v206_v62 = vmul.f32 %v809_v57, %v140_v33  ;;  %v208_v63 = vmul.f32 %v809_v57, %v148_v34 }
  0x85   :  { %326 = vperm.xlu1 %607, %v252_v35   ;;  %v144_v36 = vpop.permute.xlu1 %143  ;;  %v156_v37 = vpop.permute.xlu0 %155 }
  0x86   :  { %v207_v4 = vmul.f32 %v809_v57, %v144_v36  ;;  %v210_v25 = vmul.f32 %v809_v57, %v156_v37 }
  0x89   :  { %331 = vperm.xlu1 %607, %v253_v38   ;;  %v790_v39 = vpop.permute.xlu0 %163 }
  0x8a   :  { %v56_v40 = vpop.permute.xlu1 %55  ;;  %v212_v46 = vmul.f32 %v809_v57, %v790_v39 }
  0x8b   :  { %v125_v12 = vmul.f32 %v811_v58, %v56_v40 }
  0x8d   :  { %372 = vperm.xlu1 %607, %v368_v41   ;;  %v795_v42 = vpop.permute.xlu0 %171 }
  0x8f   :  { %v152_v43 = vpop.permute.xlu1 %151 }
  0x90   :  { %v209_v6 = vmul.f32 %v809_v57, %v152_v43 }
  0x91   :  { %v800_v45 = vpop.permute.xlu0 %179 }
  0x92   :  { %v225_v16 = vadd.f32 %v209_v6, %v125_v12 }
  0x94   :  { %v257_v47 = vpop.permute.xlu1 %256 }
  0x95   :  { %v802_v48 = vpop.permute.xlu0 %187 }
  0x98   :  { %v61_v50 = vpop.permute.xlu1 %60 }
  0x99   :  { %v804_v51 = vpop.permute.xlu0 %195  ;;  %v126_v26 = vmul.f32 %v811_v58, %v61_v50 }
  0x9b   :  { %v226_v33 = vadd.f32 %v210_v25, %v126_v26 }
  0x9c   :  { %v66_v55 = vpop.permute.xlu1 %65 }
  0x9d   :  { %v127_v27 = vmul.f32 %v811_v58, %v66_v55 }
  0x9e   :  { %v41_v56 = vpop.permute.xlu0 %40 }
  0x9f   :  { %v122_v59 = vmul.f32 %v811_v58, %v41_v56 }
  0xa1   :  { %v160_v60 = vpop.permute.xlu1 %159  ;;  %v222_v0 = vadd.f32 %v206_v62, %v122_v59 }
  0xa2   :  { %v46_v61 = vpop.permute.xlu0 %45  ;;  %v211_v22 = vmul.f32 %v809_v57, %v160_v60 }
  0xa3   :  { %v123_v1 = vmul.f32 %v811_v58, %v46_v61  ;;  %v334_v9 = vadd.f32 %v257_v47, %v222_v0 }
  0xa4   :  { %v227_v31 = vadd.f32 %v211_v22, %v127_v27 }
  0xa5   :  { %v223_v8 = vadd.f32 %v207_v4, %v123_v1  ;;  %v350_v17 = vmax.f32 %v334_v9, 0.0  ;;  %v214_v1 = vmul.f32 %v809_v57, %v795_v42 }
  0xa6   :  { %v51_v2 = vpop.permute.xlu0 %50  ;;  %v267_v3 = vpop.permute.xlu1 %266 }
  0xa7   :  { %v124_v5 = vmul.f32 %v811_v58, %v51_v2 }
  0xa9   :  { %v224_v7 = vadd.f32 %v208_v63, %v124_v5 }
  0xaa   :  { %v262_v10 = vpop.permute.xlu0 %261  ;;  %v71_v11 = vpop.permute.xlu1 %70 }
  0xab   :  { %v335_v13 = vadd.f32 %v262_v10, %v223_v8  ;;  %v336_v14 = vadd.f32 %v267_v3, %v224_v7  ;;  %v128_v47 = vmul.f32 %v811_v58, %v71_v11 }
  0xad   :  { %v351_v15 = vmax.f32 %v335_v13, 0.0  ;;  %v352_v23 = vmax.f32 %v336_v14, 0.0  ;;  %v228_v54 = vadd.f32 %v212_v46, %v128_v47 }
  0xae   :  { %v272_v18 = vpop.permute.xlu0 %271  ;;  %v76_v19 = vpop.permute.xlu1 %75 }
  0xaf   :  { %v337_v20 = vadd.f32 %v272_v18, %v225_v16  ;;  %v553_v21 = vpack.c.bf16 %v351_v15, %v350_v17  ;;  %v129_v44 = vmul.f32 %v811_v58, %v76_v19  ;;  %v216_v19 = vmul.f32 %v809_v57, %v800_v45 }
  0xb1   :  { %v353_v24 = vmax.f32 %v337_v20, 0.0  ;;  %554 = vmatprep.subr.bf16.mxu0 %v553_v21 }
  0xb2   :  { %556 = vmatpush3.bf16.msra.mxu0 %v553_v21  ;;  %v282_v30 = vpop.permute.xlu0 %281 }
  0xb3   :  { %v557_v28 = vpack.c.bf16 %v353_v24, %v352_v23  ;;  %v168_v29 = vpop.permute.xlu1 %167  ;;  %v339_v32 = vadd.f32 %v282_v30, %v227_v31 }
  0xb4   :  { %v213_v43 = vmul.f32 %v809_v57, %v168_v29 }
  0xb5   :  { %558 = vmatprep.subr.bf16.mxu0 %v557_v28  ;;  %v355_v36 = vmax.f32 %v339_v32, 0.0 }
  0xb6   :  { %560 = vmatpush3.bf16.msra.mxu0 %v557_v28  ;;  %v229_v49 = vadd.f32 %v213_v43, %v129_v44  ;;  %v292_v52 = vpop.permute.xlu0 %291  ;;  %v220_v43 = vmul.f32 %v809_v57, %v804_v51  ;;  %v367_v51 = vld [vmem:[%s870_s3 + $0x8] sm:$0x3]  ;;  %s640_s3 = smov [#allocation2]  }
  0xb7   :  { %s489_s13 = sshll.u32 %s640_s3, 4  ;;  %s490_s13 = int_to_ptr.vmem [resolvable:$true] %s489_s13 }
  0xb8   :  { %v277_v34 = vpop.permute.xlu1 %276  ;;  %v341_v53 = vadd.f32 %v292_v52, %v229_v49  ;;  %s614_s14 = scalar_lea.vmem %s490_s13, 256  ;;  %p619_p1 = scmp.lt.s32.totalorder %s490_s13, %s490_s13 }
  0xb9   :  { %v338_v35 = vadd.f32 %v277_v34, %v226_v33  ;;  %v218_v34 = vmul.f32 %v809_v57, %v802_v48  ;;  %p615_p0 = scmp.ne.s32.totalorder %s490_s13, %s614_s14  ;;  %p620_p2 = scmp.lt.s32.totalorder %s614_s14, %s614_s14 }
  0xba   :  { %v357_v59 = vmax.f32 %v341_v53, 0.0  ;;  %v302_v5 = vpop.permute.xlu0 %301 }
  0xbb   :  { %v354_v38 = vmax.f32 %v338_v35, 0.0  ;;  %p621_p3 = por %p620_p2, %p619_p1 }
  0xbc   :  { %v81_v40 = vpop.permute.xlu1 %80 }
  0xbd   :  { %v561_v41 = vpack.c.bf16 %v355_v36, %v354_v38  ;;  %v130_v2 = vmul.f32 %v811_v58, %v81_v40  ;;  %p622_p4 = pnand %p621_p3, %p615_p0 }
  0xbe   :  { %v312_v20 = vpop.permute.xlu0 %311 }
  0xbf   :  { %562 = vmatprep.subr.bf16.mxu0 %v561_v41  ;;  %v230_v7 = vadd.f32 %v214_v1, %v130_v2 }
  0xc0   :  { %v86_v37 = vpop.permute.xlu1 %85  ;;  %564 = vmatpush3.bf16.msra.mxu0 %v561_v41 }
  0xc1   :  { %v131_v39 = vmul.f32 %v811_v58, %v86_v37 }
  0xc2   :  { %v322_v35 = vpop.permute.xlu0 %321 }
  0xc5   :  { %v176_v50 = vpop.permute.xlu1 %175 }
  0xc6   :  { %v215_v0 = vmul.f32 %v809_v57, %v176_v50 }
  0xc8   :  { %v231_v3 = vadd.f32 %v215_v0, %v131_v39 }
  0xca   :  { %v287_v55 = vpop.permute.xlu1 %286  ;;  %v343_v6 = vadd.f32 %v302_v5, %v231_v3 }
  0xcb   :  { %v340_v56 = vadd.f32 %v287_v55, %v228_v54 }
  0xcc   :  { %v359_v10 = vmax.f32 %v343_v6, 0.0 }
  0xcd   :  { %v356_v60 = vmax.f32 %v340_v56, 0.0 }
  0xce   :  { %v91_v61 = vpop.permute.xlu1 %90 }
  0xcf   :  { %v565_v62 = vpack.c.bf16 %v357_v59, %v356_v60  ;;  %v132_v16 = vmul.f32 %v811_v58, %v91_v61 }
  0xd1   :  { %566 = vmatprep.subr.bf16.mxu0 %v565_v62  ;;  %v232_v22 = vadd.f32 %v216_v19, %v132_v16 }
  0xd2   :  { %v96_v63 = vpop.permute.xlu1 %95  ;;  %568 = vmatpush3.bf16.msra.mxu0 %v565_v62 }
  0xd3   :  { %v133_v42 = vmul.f32 %v811_v58, %v96_v63 }
  0xd7   :  { %v184_v4 = vpop.permute.xlu1 %183 }
  0xd8   :  { %v217_v15 = vmul.f32 %v809_v57, %v184_v4 }
  0xda   :  { %v233_v17 = vadd.f32 %v217_v15, %v133_v42 }
  0xdc   :  { %v297_v8 = vpop.permute.xlu1 %296  ;;  %v345_v21 = vadd.f32 %v312_v20, %v233_v17 }
  0xdd   :  { %v342_v9 = vadd.f32 %v297_v8, %v230_v7 }
  0xde   :  { %v361_v25 = vmax.f32 %v345_v21, 0.0 }
  0xdf   :  { %v358_v11 = vmax.f32 %v342_v9, 0.0 }
  0xe0   :  { %v101_v12 = vpop.permute.xlu1 %100 }
  0xe1   :  { %v569_v13 = vpack.c.bf16 %v359_v10, %v358_v11  ;;  %v134_v32 = vmul.f32 %v811_v58, %v101_v12 }
  0xe3   :  { %570 = vmatprep.subr.bf16.mxu0 %v569_v13  ;;  %v234_v38 = vadd.f32 %v218_v34, %v134_v32 }
  0xe4   :  { %v106_v14 = vpop.permute.xlu1 %105  ;;  %572 = vmatpush3.bf16.msra.mxu0 %v569_v13 }
  0xe5   :  { %v135_v31 = vmul.f32 %v811_v58, %v106_v14 }
  0xe9   :  { %v192_v18 = vpop.permute.xlu1 %191 }
  0xea   :  { %v219_v30 = vmul.f32 %v809_v57, %v192_v18 }
  0xec   :  { %v235_v33 = vadd.f32 %v219_v30, %v135_v31 }
  0xee   :  { %v307_v23 = vpop.permute.xlu1 %306  ;;  %v347_v36 = vadd.f32 %v322_v35, %v235_v33 }
  0xef   :  { %v344_v24 = vadd.f32 %v307_v23, %v232_v22 }
  0xf0   :  { %v363_v47 = vmax.f32 %v347_v36, 0.0 }
  0xf1   :  { %v360_v26 = vmax.f32 %v344_v24, 0.0 }
  0xf2   :  { %v111_v27 = vpop.permute.xlu1 %110 }
  0xf3   :  { %v573_v28 = vpack.c.bf16 %v361_v25, %v360_v26  ;;  %v136_v41 = vmul.f32 %v811_v58, %v111_v27 }
  0xf5   :  { %574 = vmatprep.subr.bf16.mxu0 %v573_v28  ;;  %v236_v53 = vadd.f32 %v220_v43, %v136_v41 }
  0xf6   :  { %v116_v29 = vpop.permute.xlu1 %115  ;;  %576 = vmatpush3.bf16.msra.mxu0 %v573_v28 }
  0xf7   :  { %v137_v50 = vmul.f32 %v811_v58, %v116_v29 }
  0xfb   :  { %v200_v45 = vpop.permute.xlu1 %199 }
  0xfc   :  { %v221_v44 = vmul.f32 %v809_v57, %v200_v45  ;;  %v378_v57 = vpop.permute.xlu0 %377 }
  0xfe   :  { %v237_v54 = vadd.f32 %v221_v44, %v137_v50 }
 0x100   :  { %v317_v40 = vpop.permute.xlu1 %316 }
 0x101   :  { %v346_v37 = vadd.f32 %v317_v40, %v234_v38 }
 0x103   :  { %v362_v46 = vmax.f32 %v346_v37, 0.0 }
 0x104   :  { %v327_v49 = vpop.permute.xlu1 %326 }
 0x105   :  { %v577_v52 = vpack.c.bf16 %v363_v47, %v362_v46  ;;  %v348_v48 = vadd.f32 %v327_v49, %v236_v53 }
 0x107   :  { %578 = vmatprep.subr.bf16.mxu0 %v577_v52  ;;  %v364_v59 = vmax.f32 %v348_v48, 0.0 }
 0x108   :  { %v332_v55 = vpop.permute.xlu1 %331  ;;  %580 = vmatpush3.bf16.msra.mxu0 %v577_v52 }
 0x109   :  { %v349_v56 = vadd.f32 %v332_v55, %v237_v54 }
 0x10b   :  { %v365_v60 = vmax.f32 %v349_v56, 0.0 }
 0x10c   :  { %v373_v62 = vpop.permute.xlu1 %372 }
 0x10d   :  { %v581_v61 = vpack.c.bf16 %v365_v60, %v364_v59 }
 0x10f   :  { %582 = vmatprep.subr.bf16.mxu0 %v581_v61 }
 0x110   :  { %584 = vmatpush3.bf16.msra.mxu0 %v581_v61 }
 0x113   :  { %551 = vmatmul.mubr.f32.vlgmr.msra.gmra.mrb[0].mxu0 %v367_v51 }
 0x1e6   :  { %v552_v58 = vpop.f32.mrb[0].mxu0 }
 0x1e7   :  { %v452_v63 = vadd.f32 %v552_v58, %v378_v57  ;;  %v446_v0 = vpop.f32.mrb[1].mxu0 }
 0x1e8   :  { %v447_v39 = vadd.f32 %v446_v0, %v373_v62 }
 0x1e9   :  { %v456_v1 = vsel %vm455_vm0, %v452_v63, -inf }
 0x1ea   :  { %v457_v2 = vmax.f32 %v447_v39, %v456_v1 }
 0x1ec   :  { %v458_v3 = vrot.slane %v457_v2, 4 }
 0x1ee   :  { %v459_v4 = vmax.f32 %v457_v2, %v458_v3 }
 0x1f0   :  { %v460_v5 = vrot.slane %v459_v4, 2 }
 0x1f2   :  { %v461_v6 = vmax.f32 %v459_v4, %v460_v5 }
 0x1f4   :  { %v462_v7 = vrot.slane %v461_v6, 1 }
 0x1f6   :  { %v463_v8 = vmax.f32 %v461_v6, %v462_v7 }
 0x1f8   :  { %v464_v9 = vsub.f32 %v447_v39, %v463_v8  ;;  %v465_v10 = vsub.f32 %v452_v63, %v463_v8 }
 0x1fa   :  { %v466_v11 = vmul.f32 1.442695, %v464_v9  ;;  %v468_v12 = vmul.f32 1.442695, %v465_v10 }
 0x1fc   :  { %608 = vpow2.f32 %v466_v11 }
 0x1fd   :  { %610 = vpow2.f32 %v468_v12 }
 0x206   :  { %v609_v13 = vpop.eup %608 }
 0x207   :  { %v611_v14 = vpop.eup %610 }
 0x208   :  { %v470_v15 = vsel %vm455_vm0, %v611_v14, 0.0 }
 0x209   :  { %v471_v42 = vadd.f32 %v609_v13, %v470_v15 }
 0x20b   :  { %v472_v16 = vrot.slane %v471_v42, 4 }
 0x20d   :  { %v473_v17 = vadd.f32 %v472_v16, %v471_v42 }
 0x20f   :  { %v474_v18 = vrot.slane %v473_v17, 2 }
 0x211   :  { %v475_v19 = vadd.f32 %v474_v18, %v473_v17 }
 0x213   :  { %v476_v20 = vrot.slane %v475_v19, 1 }
 0x215   :  { %v477_v21 = vadd.f32 %v476_v20, %v475_v19 }
 0x217   :  { %612 = vlog2.f32 %v477_v21 }
 0x221   :  { %v613_v22 = vpop.eup %612 }
 0x222   :  { %v479_v23 = vmul.f32 0.6931472, %v613_v22 }
 0x224   :  { %v480_v24 = vsub.f32 %v464_v9, %v479_v23  ;;  %v481_v25 = vsub.f32 %v465_v10, %v479_v23 }
 0x226   :  { %482 = vst [vmem:[#allocation2] sm:$0xff] %v480_v24  ;;  %483 = vst [vmem:[#allocation2 + $0x8] sm:$0x3] %v481_v25 }
 0x227   :  { %625 = shalt.err (!%p622_p4)
}
 0x228   :  { %s626_s17 = scalar_lea.hbm %s872_s5, 256 }
 0x229   :  { %p627_p5 = scmp.ne.s32.totalorder %s872_s5, %s626_s17  ;;  %p630_p6 = scmp.lt.u32.totalorder %s626_s17, %s872_s5 }
 0x22b   :  { %p632_p7 = pnand %p630_p6, %p627_p5 }
 0x22d   :  { %635 = shalt.err (!%p632_p7)
}
 0x22e   :  { %s641_s22 = smov 128   ;;  %s642_s23 = smov 8  }
 0x22f   :  { %495 = dma.vmem_to_hbm [thread:$0]  %s490_s13, 256, %s872_s5, [#allocation3], %s641_s22, %s641_s22, %s642_s23  }
 0x230   :  { %636 = dma.done.wait [#allocation3], 256  }
 0x231   :  { %637 = vsyncadd [#allocation3], 4294967040 }
 0x232   :  { %499 = vsyncpa [#allocation3], 1 }

</bundles_post_ra>
